<compile_context>
chip_gen: v7x
topology: tpu7x:2x2x1
jax: 0.10.0
libtpu: 0.0.40
codegen_flags: <defaults>
</compile_context>

<pallas_src>
import math
import functools

import numpy as np
import jax
import jax.numpy as jnp
from jax.experimental import pallas as pl
from jax.experimental.pallas import tpu as pltpu


# ---------------------------------------------------------------------------
# Kernel 1: fused QKV projection -> head-major Q / K / V
# ---------------------------------------------------------------------------
def _qkv_proj_kernel(x_ref, wqkv_ref, bqkv_ref, q_ref, k_ref, v_ref, acc_ref,
                     *, num_heads, head_dim):
    kk = pl.program_id(2)

    @pl.when(kk == 0)
    def _init():
        acc_ref[...] = jnp.zeros_like(acc_ref)

    # (TS, dk) @ (dk, 3E) on the MXU, f32 accumulation along the D_in axis.
    acc_ref[...] += jnp.dot(x_ref[0], wqkv_ref[...],
                            preferred_element_type=jnp.float32)

    @pl.when(kk == pl.num_programs(2) - 1)
    def _finalize():
        E = num_heads * head_dim
        qkv = acc_ref[...] + bqkv_ref[0]                        # (TS, 3E) f32
        ts = qkv.shape[0]

        def head_major(z):                                      # (TS,E)->(H,TS,hd)
            return jnp.transpose(z.reshape(ts, num_heads, head_dim), (1, 0, 2))

        # One relayout per token here replaces a relayout per KV step in kernel 2.
        q_ref[0] = head_major(qkv[:, :E]).astype(q_ref.dtype)
        k_ref[0] = head_major(qkv[:, E:2 * E]).astype(k_ref.dtype)
        v_ref[0] = head_major(qkv[:, 2 * E:]).astype(v_ref.dtype)
        # TODO(synk): for E >= 4096 also split the 3E output axis over a grid
        # dim so the (dk, 3E) weight block stays small on v7x's 64 MiB VMEM.


# ---------------------------------------------------------------------------
# Kernel 2: flash attention (online softmax over KV tiles) + output projection
# ---------------------------------------------------------------------------
def _flash_attn_kernel(q_ref, k_ref, v_ref, wo_ref, bo_ref, o_ref,
                       m_sc, l_sc, acc_sc, *, kv_len, needs_mask, exp_dtype):
    ki = pl.program_id(2)

    @pl.when(ki == 0)
    def _init():
        m_sc[...] = jnp.full_like(m_sc, -jnp.inf)
        l_sc[...] = jnp.zeros_like(l_sc)
        acc_sc[...] = jnp.zeros_like(acc_sc)

    qh = q_ref[0]                          # (H, TQ, hd), already * 1/sqrt(hd)
    kh = k_ref[0]                          # (H, TK, hd)
    vh = v_ref[0]                          # (H, TK, hd)
    H, TQ, hd = qh.shape
    TK = kh.shape[1]

    # logits for all heads in one contraction (no per-head unroll, no relayout)
    s = jnp.einsum('hqd,hkd->hqk', qh, kh,
                   preferred_element_type=jnp.float32)          # (H,TQ,TK) f32

    if needs_mask:                                              # static python bool
        kv_pos = jax.lax.broadcasted_iota(jnp.int32, (1, 1, TK), 2) + ki * TK
        s = jnp.where(kv_pos < kv_len, s, -jnp.inf)

    # online softmax update; exps optionally in bf16 (EUP), state stays f32
    m_prev = m_sc[...]                                          # (H, TQ, 1)
    m_new = jnp.maximum(m_prev, jnp.max(s, axis=-1, keepdims=True))
    alpha = jnp.exp((m_prev - m_new).astype(exp_dtype)).astype(jnp.float32)
    p = jnp.exp((s - m_new).astype(exp_dtype))                  # (H, TQ, TK)

    l_sc[...] = alpha * l_sc[...] + jnp.sum(p.astype(jnp.float32),
                                            axis=-1, keepdims=True)
    acc_sc[...] = alpha * acc_sc[...] + jnp.einsum(
        'hqk,hkd->hqd', p.astype(vh.dtype), vh,
        preferred_element_type=jnp.float32)                     # (H, TQ, hd) f32
    m_sc[...] = m_new

    @pl.when(ki == pl.num_programs(2) - 1)
    def _finalize():
        inv_l = pl.reciprocal(l_sc[...], approx=True)           # EUP, nearly free
        ctx = acc_sc[...] * inv_l                               # (H, TQ, hd)
        vals = jnp.transpose(ctx, (1, 0, 2)).reshape(TQ, H * hd)
        o = jnp.dot(vals.astype(wo_ref.dtype), wo_ref[...],
                    preferred_element_type=jnp.float32) + bo_ref[0]
        o_ref[0] = o.astype(o_ref.dtype)                        # one (TQ, E) HBM write


# ---------------------------------------------------------------------------
# Tiling helpers
# ---------------------------------------------------------------------------
def _round_up(x, m):
    return ((x + m - 1) // m) * m


def _largest_div8(n, limit):
    """Largest multiple of 8 dividing n (n is a multiple of 8), <= limit."""
    best, d = 8, 8
    top = min(limit, n)
    while d <= top:
        if n % d == 0:
            best = d
        d += 8
    return best


def _vmem_capacity_bytes():
    try:
        return int(pltpu.get_tpu_info().vmem_capacity_bytes)
    except Exception:
        return 64 * 1024 * 1024            # conservative (v7x-sized) fallback


def _choose_seq_tiles(S, B, q_target, kv_target):
    """Pick (q_tile, kv_tile, padded_S): tiles are multiples of 8, both divide
    padded_S, bounded by the targets; never falls back to an unboundedly large
    single tile for awkward S (the sequence is padded + masked instead)."""
    q_target = max(8, _round_up(q_target, 8))
    kv_target = max(8, _round_up(kv_target, 8))
    s8 = _round_up(max(S, 1), 8)
    tk = min(kv_target, s8)
    sp = _round_up(S, tk)                  # padded length (multiple of tk and 8)
    tq = _largest_div8(sp, q_target)
    # v7x megacore: keep >= 2 parallel (q-tile, batch) grid steps when possible
    # without creating degenerate tiny tiles.
    if B * (sp // tq) < 2 and sp >= 16:
        tq_half = _largest_div8(sp, sp // 2)
        if tq_half >= 64:
            tq = tq_half
    return tq, tk, sp


def _choose_k_tile(d_in, target=512):
    """Contraction tile for kernel 1: a multiple of 128 dividing d_in, else d_in."""
    if d_in <= target or d_in % 128 != 0:
        return d_in
    best, t = 128, 128
    while t <= target:
        if d_in % t == 0:
            best = t
        t += 128
    return best


# ---------------------------------------------------------------------------
# Wrapper: takes weights in the PyTorch (out, in) layout of the module.
# ---------------------------------------------------------------------------
def multi_head_attention(x, wqkv, bqkv, wo, bo, num_heads, *,
                         compute_dtype=None, q_tile=None, kv_tile=None):
    """Forward pass of the PyTorch MultiHeadAttention module (mask=None path).

    x    : (B, S, D_in)
    wqkv : (3E, D_in)  qkv_proj.weight (PyTorch per-head-interleaved rows)
    bqkv : (3E,)       qkv_proj.bias
    wo   : (E, E)      o_proj.weight
    bo   : (E,)        o_proj.bias
    """
    # TODO(synk): optional `mask` argument and `return_attention=True` are not
    # implemented (mask=None default path only).
    B, S, D_in = x.shape
    three_e = int(wqkv.shape[0])
    E = three_e // 3
    hd = E // num_heads
    H = num_heads

    if compute_dtype is None:
        compute_dtype = x.dtype
    compute_dtype = np.dtype(compute_dtype)
    out_dtype = x.dtype
    # bf16 exponentials ~double EUP throughput on v6e/v7x; keep f32 on f32 path.
    exp_dtype = jnp.float32 if compute_dtype == np.dtype(np.float32) else jnp.bfloat16

    # --- per-generation tiling / VMEM limits --------------------------------
    vmem_cap = _vmem_capacity_bytes()
    big_vmem = vmem_cap >= 100 * 1024 * 1024   # v5e/v6e: 128 MiB, v7x: 64 MiB
    if q_tile is None:
        q_tile = 512 if big_vmem else 256
    if kv_tile is None:
        kv_tile = 512 if big_vmem else 256
    vmem_limit = min(int(vmem_cap * 7 // 8), 112 * 1024 * 1024)

    tq, tk, sp = _choose_seq_tiles(S, B, q_tile, kv_tile)
    ts = tq                                    # kernel-1 sequence tile
    dk = _choose_k_tile(D_in)
    needs_mask = sp > S

    # --- one-time weight preparation (outside the kernels) ------------------
    # qkv output column (h*3*hd + t*hd + j) is (q,k,v)[t] of head h, feature j.
    # Permute the rows into stacked head-major [Wq; Wk; Wv].
    h_idx = jnp.arange(H)[:, None] * (3 * hd)
    j_idx = jnp.arange(hd)[None, :]
    perm = jnp.concatenate(
        [(h_idx + t * hd + j_idx).reshape(-1) for t in range(3)])      # (3E,)
    w = wqkv[perm]                                                     # (3E, D_in)
    b = bqkv[perm]
    # fold 1/sqrt(d_k) into the Q projection (zero runtime cost)
    scale = jnp.concatenate([jnp.full((E,), 1.0 / math.sqrt(hd), w.dtype),
                             jnp.ones((2 * E,), w.dtype)])
    w = w * scale[:, None]
    b = b * scale

    wqkv_t = w.T.astype(compute_dtype)             # (D_in, 3E)
    bqkv_r = b.reshape(1, -1).astype(jnp.float32)  # (1, 3E)
    wo_t = wo.T.astype(compute_dtype)              # (E, E) as (in, out)
    bo_r = bo.reshape(1, -1).astype(jnp.float32)   # (1, E)

    x_c = x.astype(compute_dtype)
    if sp > S:
        x_c = jnp.pad(x_c, ((0, 0), (0, sp - S), (0, 0)))

    # ---- kernel 1: QKV projection -> head-major (B, H, sp, hd) Q / K / V ----
    qkv_struct = jax.ShapeDtypeStruct((B, H, sp, hd), compute_dtype)
    qkv_out_spec = pl.BlockSpec((1, H, ts, hd), lambda si, bb, kk: (bb, 0, si, 0))
    # TODO(synk): single-buffer the constant-index weight/bias inputs with
    # pipeline_mode=pl.Buffered(1) to halve their VMEM footprint (kept on the
    # default double-buffering here for compile safety).
    q, k, v = pl.pallas_call(
        functools.partial(_qkv_proj_kernel, num_heads=H, head_dim=hd),
        out_shape=(qkv_struct, qkv_struct, qkv_struct),
        grid_spec=pltpu.PrefetchScalarGridSpec(
            num_scalar_prefetch=0,
            grid=(sp // ts, B, D_in // dk),          # contraction axis last
            in_specs=[
                pl.BlockSpec((1, ts, dk), lambda si, bb, kk: (bb, si, kk)),
                pl.BlockSpec((dk, three_e), lambda si, bb, kk: (kk, 0)),
                pl.BlockSpec((1, three_e), lambda si, bb, kk: (0, 0)),
            ],
            out_specs=(qkv_out_spec, qkv_out_spec, qkv_out_spec),
            scratch_shapes=[pltpu.VMEM((ts, three_e), jnp.float32)],
        ),
        compiler_params=pltpu.CompilerParams(
            dimension_semantics=("parallel", "parallel", "arbitrary"),
            vmem_limit_bytes=vmem_limit),
    )(x_c, wqkv_t, bqkv_r)

    # ---- kernel 2: flash attention + o_proj ---------------------------------
    # TODO(synk): optionally fuse the Q projection here (consume x + Wq
    # directly) to save the Q HBM round trip on bandwidth-poor parts (v5e).
    kernel = functools.partial(_flash_attn_kernel, kv_len=S,
                               needs_mask=needs_mask, exp_dtype=exp_dtype)
    out = pl.pallas_call(
        kernel,
        out_shape=jax.ShapeDtypeStruct((B, sp, E), out_dtype),
        grid_spec=pltpu.PrefetchScalarGridSpec(
            num_scalar_prefetch=0,
            grid=(sp // tq, B, sp // tk),            # kv (reduction) axis last
            in_specs=[
                pl.BlockSpec((1, H, tq, hd), lambda qi, bb, ki: (bb, 0, qi, 0)),
                pl.BlockSpec((1, H, tk, hd), lambda qi, bb, ki: (bb, 0, ki, 0)),
                pl.BlockSpec((1, H, tk, hd), lambda qi, bb, ki: (bb, 0, ki, 0)),
                pl.BlockSpec((E, E), lambda qi, bb, ki: (0, 0)),
                pl.BlockSpec((1, E), lambda qi, bb, ki: (0, 0)),
            ],
            out_specs=pl.BlockSpec((1, tq, E), lambda qi, bb, ki: (bb, qi, 0)),
            scratch_shapes=[
                pltpu.VMEM((H, tq, 1), jnp.float32),    # running max
                pltpu.VMEM((H, tq, 1), jnp.float32),    # running sum
                pltpu.VMEM((H, tq, hd), jnp.float32),   # accumulator
            ],
        ),
        compiler_params=pltpu.CompilerParams(
            dimension_semantics=("parallel", "parallel", "arbitrary"),
            vmem_limit_bytes=vmem_limit),
    )(q, k, v, wo_t, bo_r)

    if sp > S:
        out = out[:, :S, :]
    return out


# ---------------------------------------------------------------------------
# Reference (pure JAX, mirrors the PyTorch forward with PyTorch-layout weights)
# ---------------------------------------------------------------------------
def reference_mha(x, wqkv_pt, bqkv, wo_pt, bo, num_heads):
    B, S, D_in = x.shape
    E = wo_pt.shape[0]
    hd = E // num_heads
    qkv = jnp.einsum("bsd,ed->bse", x, wqkv_pt) + bqkv           # Linear: x @ W.T + b
    qkv = qkv.reshape(B, S, num_heads, 3 * hd).transpose(0, 2, 1, 3)
    q, k, v = jnp.split(qkv, 3, axis=-1)                         # (B, H, S, hd)
    logits = jnp.einsum("bhqd,bhkd->bhqk", q, k) / math.sqrt(hd)
    attn = jax.nn.softmax(logits, axis=-1)
    vals = jnp.einsum("bhqk,bhkd->bhqd", attn, v)
    vals = vals.transpose(0, 2, 1, 3).reshape(B, S, E)
    return jnp.einsum("bse,fe->bsf", vals, wo_pt) + bo


def xavier_uniform(key, shape):
    fan_out, fan_in = shape
    bound = math.sqrt(6.0 / (fan_in + fan_out))
    return jax.random.uniform(key, shape, jnp.float32, -bound, bound)


if __name__ == "__main__":
    B, S, D_in = 2, 8, 32
    E, H = 32, 4

    key = jax.random.PRNGKey(0)
    kx, kqkv, ko, kx2 = jax.random.split(key, 4)

    x = jax.random.normal(kx, (B, S, D_in), jnp.float32)
    # PyTorch Linear weights are (out, in); biases zero per _reset_parameters.
    wqkv_pt = xavier_uniform(kqkv, (3 * E, D_in))
    wo_pt = xavier_uniform(ko, (E, E))
    bqkv = jnp.zeros((3 * E,), jnp.float32)
    bo = jnp.zeros((E,), jnp.float32)

    ref = reference_mha(x, wqkv_pt, bqkv, wo_pt, bo, H)

    # f32 path (tight check; approx EUP reciprocal in the normalizer)
    out = multi_head_attention(x, wqkv_pt, bqkv, wo_pt, bo, H,
                               compute_dtype=jnp.float32)
    out = jax.block_until_ready(out)
    assert out.shape == (B, S, E)
    assert jnp.allclose(out, ref, atol=5e-3, rtol=5e-3), "f32 mismatch vs reference"

    # bf16 MXU + bf16-exp path (softmax state / accumulation stay f32) — loose check
    out_bf16 = multi_head_attention(x, wqkv_pt, bqkv, wo_pt, bo, H,
                                    compute_dtype=jnp.bfloat16)
    out_bf16 = jax.block_until_ready(out_bf16)
    assert jnp.allclose(out_bf16, ref, atol=1e-1, rtol=1e-1), "bf16 mismatch vs reference"

    # ragged sequence length (exercises the padding + KV-masking path)
    S2 = 10
    x2 = jax.random.normal(kx2, (B, S2, D_in), jnp.float32)
    ref2 = reference_mha(x2, wqkv_pt, bqkv, wo_pt, bo, H)
    out2 = multi_head_attention(x2, wqkv_pt, bqkv, wo_pt, bo, H,
                                compute_dtype=jnp.float32)
    out2 = jax.block_until_ready(out2)
    assert out2.shape == (B, S2, E)
    assert jnp.allclose(out2, ref2, atol=5e-3, rtol=5e-3), "padded-S mismatch vs reference"

    print("KERNEL_OK")
</pallas_src>

<mosaic_0001>
module attributes {stable_mosaic.version = 11 : i64} {
  func.func @_qkv_proj_kernel(%arg0: i32, %arg1: i32, %arg2: i32, %arg3: memref<1x8x32xf32, #tpu.memory_space<vmem>>, %arg4: memref<32x96xf32, #tpu.memory_space<vmem>>, %arg5: memref<1x96xf32, #tpu.memory_space<vmem>>, %arg6: memref<1x4x8x8xf32, #tpu.memory_space<vmem>>, %arg7: memref<1x4x8x8xf32, #tpu.memory_space<vmem>>, %arg8: memref<1x4x8x8xf32, #tpu.memory_space<vmem>>, %arg9: memref<8x96xf32, #tpu.memory_space<vmem>>) attributes {dimension_semantics = [#tpu.dimension_semantics<parallel>, #tpu.dimension_semantics<parallel>, #tpu.dimension_semantics<arbitrary>], iteration_bounds = array<i64: 1, 2, 1>, scalar_prefetch = 0 : i64, scratch_operands = 1 : i64, tpu.core_type = #tpu.core_type<tc>, window_params = [{transform_indices = @transform_0, window_bounds = array<i64: 1, 8, 32>}, {transform_indices = @transform_1, window_bounds = array<i64: 32, 96>}, {pipeline_mode = #tpu.pipeline_mode<synchronous>, transform_indices = @transform_2, window_bounds = array<i64: 1, 96>}, {transform_indices = @transform_3, window_bounds = array<i64: 1, 4, 8, 8>}, {transform_indices = @transform_4, window_bounds = array<i64: 1, 4, 8, 8>}, {transform_indices = @transform_5, window_bounds = array<i64: 1, 4, 8, 8>}]} {
    %c0_i32 = arith.constant 0 : i32
    %0 = arith.cmpi eq, %arg2, %c0_i32 : i32
    %1 = arith.extui %0 : i1 to i32
    %c0_i32_0 = arith.constant 0 : i32
    %2 = arith.cmpi ne, %1, %c0_i32_0 : i32
    scf.if %2 {
      %cst_11 = arith.constant 0.000000e+00 : f32
      %13 = vector.broadcast %cst_11 : f32 to vector<8x96xf32>
      %c0_12 = arith.constant 0 : index
      %c0_13 = arith.constant 0 : index
      %14 = vector.load %arg9[%c0_12, %c0_13] : memref<8x96xf32, #tpu.memory_space<vmem>>, vector<8x96xf32>
      tpu.vector_store %arg9[%c0_12, %c0_13], %13 {strides = array<i32>} : memref<8x96xf32, #tpu.memory_space<vmem>>, vector<8x96xf32>,
    } else {
    }
    %c0 = arith.constant 0 : index
    %c0_1 = arith.constant 0 : index
    %3 = vector.load %arg9[%c0, %c0_1] : memref<8x96xf32, #tpu.memory_space<vmem>>, vector<8x96xf32>
    %c0_2 = arith.constant 0 : index
    %c0_3 = arith.constant 0 : index
    %c0_4 = arith.constant 0 : index
    %4 = vector.load %arg3[%c0_2, %c0_3, %c0_4] : memref<1x8x32xf32, #tpu.memory_space<vmem>>, vector<1x8x32xf32>
    %5 = vector.shape_cast %4 : vector<1x8x32xf32> to vector<8x32xf32>
    %c0_5 = arith.constant 0 : index
    %c0_6 = arith.constant 0 : index
    %6 = vector.load %arg4[%c0_5, %c0_6] : memref<32x96xf32, #tpu.memory_space<vmem>>, vector<32x96xf32>
    %cst = arith.constant dense<0.000000e+00> : vector<8x96xf32>
    %7 = tpu.matmul %5, %6, %cst {dimension_numbers = #tpu.dot_dimension_numbers<[1], [0], [0], [1], [0, 0, 1, 1], [], []>} : vector<8x32xf32>, vector<32x96xf32>, vector<8x96xf32> -> vector<8x96xf32>
    %8 = arith.addf %3, %7 : vector<8x96xf32>
    %c0_7 = arith.constant 0 : index
    %c0_8 = arith.constant 0 : index
    %9 = vector.load %arg9[%c0_7, %c0_8] : memref<8x96xf32, #tpu.memory_space<vmem>>, vector<8x96xf32>
    tpu.vector_store %arg9[%c0_7, %c0_8], %8 {strides = array<i32>} : memref<8x96xf32, #tpu.memory_space<vmem>>, vector<8x96xf32>,
    %c0_i32_9 = arith.constant 0 : i32
    %10 = arith.cmpi eq, %arg2, %c0_i32_9 : i32
    %11 = arith.extui %10 : i1 to i32
    %c0_i32_10 = arith.constant 0 : i32
    %12 = arith.cmpi ne, %11, %c0_i32_10 : i32
    scf.if %12 {
      %c0_11 = arith.constant 0 : index
      %c0_12 = arith.constant 0 : index
      %13 = vector.load %arg9[%c0_11, %c0_12] : memref<8x96xf32, #tpu.memory_space<vmem>>, vector<8x96xf32>
      %c0_13 = arith.constant 0 : index
      %c0_14 = arith.constant 0 : index
      %14 = vector.load %arg5[%c0_13, %c0_14] : memref<1x96xf32, #tpu.memory_space<vmem>>, vector<1x96xf32>
      %15 = vector.shape_cast %14 : vector<1x96xf32> to vector<96xf32>
      %16 = vector.shape_cast %15 : vector<96xf32> to vector<1x96xf32>
      %17 = vector.broadcast %16 : vector<1x96xf32> to vector<8x96xf32>
      %18 = arith.addf %13, %17 : vector<8x96xf32>
      %19 = vector.extract_strided_slice %18 {offsets = [0, 0], sizes = [8, 32], strides = [1, 1]} : vector<8x96xf32> to vector<8x32xf32>
      %20 = vector.shape_cast %19 : vector<8x32xf32> to vector<8x4x8xf32>
      %21 = tpu.transpose %20, [1, 0, 2] : vector<8x4x8xf32> -> vector<4x8x8xf32>
      %c0_15 = arith.constant 0 : index
      %c0_16 = arith.constant 0 : index
      %c0_17 = arith.constant 0 : index
      %c0_18 = arith.constant 0 : index
      %22 = vector.load %arg6[%c0_15, %c0_16, %c0_17, %c0_18] : memref<1x4x8x8xf32, #tpu.memory_space<vmem>>, vector<1x4x8x8xf32>
      %23 = vector.shape_cast %22 : vector<1x4x8x8xf32> to vector<4x8x8xf32>
      %24 = vector.shape_cast %21 : vector<4x8x8xf32> to vector<1x4x8x8xf32>
      tpu.vector_store %arg6[%c0_15, %c0_16, %c0_17, %c0_18], %24 {strides = array<i32>} : memref<1x4x8x8xf32, #tpu.memory_space<vmem>>, vector<1x4x8x8xf32>,
      %25 = vector.extract_strided_slice %18 {offsets = [0, 32], sizes = [8, 32], strides = [1, 1]} : vector<8x96xf32> to vector<8x32xf32>
      %26 = vector.shape_cast %25 : vector<8x32xf32> to vector<8x4x8xf32>
      %27 = tpu.transpose %26, [1, 0, 2] : vector<8x4x8xf32> -> vector<4x8x8xf32>
      %c0_19 = arith.constant 0 : index
      %c0_20 = arith.constant 0 : index
      %c0_21 = arith.constant 0 : index
      %c0_22 = arith.constant 0 : index
      %28 = vector.load %arg7[%c0_19, %c0_20, %c0_21, %c0_22] : memref<1x4x8x8xf32, #tpu.memory_space<vmem>>, vector<1x4x8x8xf32>
      %29 = vector.shape_cast %28 : vector<1x4x8x8xf32> to vector<4x8x8xf32>
      %30 = vector.shape_cast %27 : vector<4x8x8xf32> to vector<1x4x8x8xf32>
      tpu.vector_store %arg7[%c0_19, %c0_20, %c0_21, %c0_22], %30 {strides = array<i32>} : memref<1x4x8x8xf32, #tpu.memory_space<vmem>>, vector<1x4x8x8xf32>,
      %31 = vector.extract_strided_slice %18 {offsets = [0, 64], sizes = [8, 32], strides = [1, 1]} : vector<8x96xf32> to vector<8x32xf32>
      %32 = vector.shape_cast %31 : vector<8x32xf32> to vector<8x4x8xf32>
      %33 = tpu.transpose %32, [1, 0, 2] : vector<8x4x8xf32> -> vector<4x8x8xf32>
      %c0_23 = arith.constant 0 : index
      %c0_24 = arith.constant 0 : index
      %c0_25 = arith.constant 0 : index
      %c0_26 = arith.constant 0 : index
      %34 = vector.load %arg8[%c0_23, %c0_24, %c0_25, %c0_26] : memref<1x4x8x8xf32, #tpu.memory_space<vmem>>, vector<1x4x8x8xf32>
      %35 = vector.shape_cast %34 : vector<1x4x8x8xf32> to vector<4x8x8xf32>
      %36 = vector.shape_cast %33 : vector<4x8x8xf32> to vector<1x4x8x8xf32>
      tpu.vector_store %arg8[%c0_23, %c0_24, %c0_25, %c0_26], %36 {strides = array<i32>} : memref<1x4x8x8xf32, #tpu.memory_space<vmem>>, vector<1x4x8x8xf32>,
    } else {
    }
    return
  }
  func.func @transform_0(%arg0: i32, %arg1: i32, %arg2: i32) -> (i32, i32, i32) {
    %c0_i32 = arith.constant 0 : i32
    return %arg1, %arg0, %arg2 : i32, i32, i32
  }
  func.func @transform_1(%arg0: i32, %arg1: i32, %arg2: i32) -> (i32, i32) {
    %c0_i32 = arith.constant 0 : i32
    %c0_i32_0 = arith.constant 0 : i32
    return %arg2, %c0_i32 : i32, i32
  }
  func.func @transform_2(%arg0: i32, %arg1: i32, %arg2: i32) -> (i32, i32) {
    %c0_i32 = arith.constant 0 : i32
    %c0_i32_0 = arith.constant 0 : i32
    %c0_i32_1 = arith.constant 0 : i32
    return %c0_i32, %c0_i32_0 : i32, i32
  }
  func.func @transform_3(%arg0: i32, %arg1: i32, %arg2: i32) -> (i32, i32, i32, i32) {
    %c0_i32 = arith.constant 0 : i32
    %c0_i32_0 = arith.constant 0 : i32
    %c0_i32_1 = arith.constant 0 : i32
    return %arg1, %c0_i32, %arg0, %c0_i32_0 : i32, i32, i32, i32
  }
  func.func @transform_4(%arg0: i32, %arg1: i32, %arg2: i32) -> (i32, i32, i32, i32) {
    %c0_i32 = arith.constant 0 : i32
    %c0_i32_0 = arith.constant 0 : i32
    %c0_i32_1 = arith.constant 0 : i32
    return %arg1, %c0_i32, %arg0, %c0_i32_0 : i32, i32, i32, i32
  }
  func.func @transform_5(%arg0: i32, %arg1: i32, %arg2: i32) -> (i32, i32, i32, i32) {
    %c0_i32 = arith.constant 0 : i32
    %c0_i32_0 = arith.constant 0 : i32
    %c0_i32_1 = arith.constant 0 : i32
    return %arg1, %c0_i32, %arg0, %c0_i32_0 : i32, i32, i32, i32
  }
}

</mosaic_0001>

<bundles_post_ra>
// kernel: tpu_custom_call.1
= control target key start
LH: loop header
LB: loop body
LE: loop exit
PB: predicated region body
PF: predicated region fallthrough
CT: control target
= control target key end

     0   :  { %11 = vsyncpa [#allocation4], 0  ;;  %s1874_s0 = inlined_call_operand.hbm [shape: f32[2,8,32], index: 0, kind: input, shape index: {}]   ;;  %s1875_s1 = inlined_call_operand.hbm [shape: f32[32,96], index: 1, kind: input, shape index: {}]   ;;  %s1876_s2 = inlined_call_operand.vmem [shape: f32[1,96], index: 2, kind: input, shape index: {}]   ;;  %s1877_s3 = inlined_call_operand.hbm [shape: f32[2,4,8,8], index: 3, kind: output, shape index: {0}]   ;;  %s1878_s4 = inlined_call_operand.hbm [shape: f32[2,4,8,8], index: 4, kind: output, shape index: {1}]   ;;  %s1879_s5 = inlined_call_operand.hbm [shape: f32[2,4,8,8], index: 5, kind: output, shape index: {2}]  }
   0x1   :  { %13 = vsyncpa [#allocation4 + $0x1], 0 }
   0x2   :  { %14 = vsyncpa [#allocation7], 0 }
   0x3   :  { %15 = vsyncpa [#allocation5], 0 }
   0x4   :  { %17 = vsyncpa [#allocation5 + $0x1], 0 }
   0x5   :  { %18 = vsyncpa [#allocation10], 0 }
   0x6   :  { %20 = vsyncpa [#allocation10 + $0x1], 0  ;;  %s1502_s18 = smov 0   ;;  %s1504_s19 = smov 0  }
   0x7   :  { %s1506_s20 = smov 0   ;;  %s1508_s21 = smov 0  }
   0x8   :  { %s1510_s22 = smov 0   ;;  %s1512_s23 = smov 0  }
   0x9 LB: > { %s1533_s24 = sadd.s32 4294967295, %s1451_s23   ;;  %s1883_s25 = sadd.s32 4294967294, %s1451_s23   ;;  %s1451_s23 = sphi %s1512_s23, %s26_s23   ;;  %s1447_s22 = sphi %s1510_s22, %s1903_s22   ;;  %s1443_s21 = sphi %s1508_s21, %s1902_s21   ;;  %s1439_s20 = sphi %s1506_s20, %s1901_s20   ;;  %s1435_s19 = sphi %s1504_s19, %s1900_s19   ;;  %s1431_s18 = sphi %s1502_s18, %s1899_s18  }
   0xa   : > { %p69_p0 = scmp.ne.s32.totalorder %s1435_s19, %s1431_s18  ;;  %p1880_p1 = scmp.eq.s32.totalorder %s1533_s24, 0 }
   0xb   : > { %p148_p3 = scmp.eq.s32.totalorder %s1883_s25, 1  ;;  %p1095_p5 = scmp.ge.s32.totalorder %s1451_s23, 1 }
   0xc   : > { %p1544_p4 = por %p1880_p1, %p69_p0  ;;  %p211_p7 = scmp.lt.s32.totalorder %s1451_s23, 3 }
   0xd   : > { %p1549_p6 = por %p148_p3, %p69_p0  ;;  %s1453_s29 = smov [#allocation6]  }
   0xe   : > { %s1884_s26 = scalar_select %p1544_p4, 1, 0 }
   0xf   : > { %s1885_s27 = scalar_select %p1549_p6, 1, 0 }
  0x10   : > { %p1554_p8 = pnand %p1095_p5, %p211_p7  ;;  %s226_s30 = sshll.u32 %s1453_s29, 4  ;;  %s227_s30 = int_to_ptr.vmem [resolvable:$true] %s226_s30 }
  0x11   : > { %s41_s7 = sadd.s32 1, %s1447_s22  ;;  %s1247_s10 = scalar_lea.hbm %s1875_s1, 512 }
  0x12   : > { %s1886_s28 = scalar_select %p1554_p8, 1, 0 }
  0x13   : > { %p1162_p9 = pneg %p1554_p8  ;;  %p1248_p12 = scmp.ne.s32.totalorder %s1875_s1, %s1247_s10 }
  0x14   : > { %p1254_p5 = scmp.lt.u32.totalorder %s1247_s10, %s1875_s1 }
  0x15   : > { %p1563_p11 = pnand %p1162_p9, %p1880_p1 }
  0x17   : > { %p1249_p13 = pneg %p1563_p11 }
  0x19   : > { %p1250_p0 = pnand %p1249_p13, %p1248_p12 }
  0x1b   : > { %p1251_p3 = pneg %p1250_p0 }
  0x1d   : > { %p1256_p7 = pnand %p1254_p5, %p1251_p3 }
  0x1f   : > { %1259 = shalt.err (!%p1256_p7)
}
  0x20   : > { %s1260_s15 = scalar_lea.vmem %s227_s30, 512  ;;  %p1268_p2 = scmp.lt.s32.totalorder %s227_s30, %s227_s30 }
  0x21   : > { %p1261_p9 = scmp.ne.s32.totalorder %s227_s30, %s1260_s15  ;;  %p1269_p6 = scmp.lt.s32.totalorder %s1260_s15, %s1260_s15 }
  0x23   : > { %p1263_p10 = pnand %p1261_p9, %p1249_p13  ;;  %p1270_p4 = por %p1269_p6, %p1268_p2 }
  0x25   : > { %p1264_p1 = pneg %p1263_p10 }
  0x27   : > { %p1271_p8 = pnand %p1270_p4, %p1264_p1 }
  0x29   : > { %1274 = shalt.err (!%p1271_p8)
}
  0x2a   : > { %s1454_s16 = smov 128   ;;  %s1455_s17 = smov 8  }
  0x2b   : > { %1165 = dma.hbm_to_vmem [thread:$0]  (!%p1563_p11), %s1875_s1, 512, %s227_s30, [#allocation7], %s1454_s16, %s1454_s16, %s1455_s17  }
  0x2c   : > { %p43_p1 = scmp.ge.s32.totalorder %s41_s7, 2  ;;  %s56_s9 = sadd.s32 1, %s1439_s20 }
  0x2d   : > { %p63_p2 = scmp.ne.s32.totalorder %s1439_s20, %s1435_s19  ;;  %p64_p4 = scmp.eq.s32.totalorder %s1451_s23, 0 }
  0x2e   : > { %s1905_s7 = smov (%p43_p1, %s41_s7), 0  ;;  %p1889_p8 = scmp.eq.s32.totalorder %s1533_s24, 1 }
  0x2f   : > { %p1590_p6 = por %p64_p4, %p63_p2  ;;  %s49_s6 = ssub.s32 %s1447_s22, %s1905_s7 }
  0x30   : > { %p1596_p10 = por %p1889_p8, %p63_p2  ;;  %p1181_p12 = scmp.lt.s32.totalorder %s1451_s23, 2 }
  0x31   : > { %p54_p11 = scmp.eq.s32.totalorder %s49_s6, 0  ;;  %s243_s30 = sand.u32 1, %s1439_s20  }
  0x32   : > { %s1098_s12 = sshll.u32 %s243_s30, 3  ;;  %s1099_s14 = sshll.u32 %s1447_s22, 7 }
  0x33   : > { %s1605_s13 = scalar_select %p54_p11, %s1439_s20, %s56_s9  }
  0x34   : > { %s1611_s17 = scalar_lea.hbm %s1874_s0, %s1099_s14  ;;  %s247_s29 = scalar_lea.vmem [#allocation3], %s1098_s12 }
  0x35   : > { %s256_s8 = sshll.u32 %s247_s29, 4  ;;  %p1617_p13 = pnand %p1181_p12, %p1590_p6  ;;  %s1613_s8 = int_to_ptr.vmem [resolvable:$true] %s256_s8 }
  0x36   : > { %s244_s9 = scalar_lea.sflag [#allocation4], %s243_s30  ;;  %s1275_s25 = scalar_lea.hbm %s1611_s17, 128 }
  0x37   : > { %p1276_p0 = scmp.ne.s32.totalorder %s1611_s17, %s1275_s25  ;;  %p1277_p3 = pneg %p1617_p13 }
  0x38   : > { %s1280_s15 = scalar_lea.hbm %s1874_s0, 256  ;;  %p1281_p9 = scmp.lt.u32.totalorder %s1611_s17, %s1874_s0 }
  0x39   : > { %p1278_p5 = pnand %p1277_p3, %p1276_p0  ;;  %p1282_p1 = scmp.lt.u32.totalorder %s1280_s15, %s1275_s25 }
  0x3a   : > { %p1284_p4 = scmp.lt.u32.totalorder %s1275_s25, %s1611_s17 }
  0x3b   : > { %p1279_p7 = pneg %p1278_p5  ;;  %p1283_p2 = por %p1282_p1, %p1281_p9 }
  0x3d   : > { %p1285_p6 = por %p1284_p4, %p1283_p2 }
  0x3f   : > { %p1286_p8 = pnand %p1285_p6, %p1279_p7 }
  0x41   : > { %1289 = shalt.err (!%p1286_p8)
}
  0x42   : > { %s1290_s30 = scalar_lea.vmem %s1613_s8, 128  ;;  %s1456_s29 = smov [#allocation3]  }
  0x43   : > { %p1291_p12 = scmp.ne.s32.totalorder %s1613_s8, %s1290_s30  ;;  %s1295_s12 = sshll.u32 %s1456_s29, 4  ;;  %s1296_s12 = int_to_ptr.vmem [resolvable:$false] %s1295_s12 }
  0x44   : > { %s1297_s14 = scalar_lea.vmem %s1296_s12, 256  ;;  %p1298_p5 = scmp.lt.s32.totalorder %s1613_s8, %s1296_s12 }
  0x45   : > { %p1293_p11 = pnand %p1291_p12, %p1277_p3  ;;  %p1299_p9 = scmp.lt.s32.totalorder %s1297_s14, %s1290_s30 }
  0x47   : > { %p1294_p0 = pneg %p1293_p11  ;;  %p1300_p1 = por %p1299_p9, %p1298_p5 }
  0x49   : > { %p1301_p2 = pnand %p1300_p1, %p1294_p0 }
  0x4b   : > { %1304 = shalt.err (!%p1301_p2)
}
  0x4c   : > { %1169 = dma.hbm_to_vmem [thread:$0]  (!%p1617_p13), %s1611_s17, 128, %s1613_s8, %s244_s9  }
  0x4d   : > { %p1892_p7 = scmp.ne.s32.totalorder %s1886_s28, 0 }
  0x4e   : > { %s1649_s25 = sand.u32 (!%p1892_p7), 1, %s1435_s19   ;;  %p1893_p3 = scmp.ne.s32.totalorder (!%p1892_p7), %s1884_s26, 0 }
  0x4f   : > { %265 = sbr.rel (%p1892_p7) target bundleno = 616 (0x268), region = 32  ;;  %s1101_s15 = sshll.u32 (!%p1892_p7), %s1649_s25, 3 }
  0x50   : > { %s268_s10 = scalar_lea.sflag (!%p1892_p7), [#allocation4], %s1649_s25  ;;  %s271_s16 = scalar_lea.vmem (!%p1892_p7), [#allocation3], %s1101_s15 }
  0x56   : > { %1414 = dma.done.wait (%p1893_p3), %s268_s10, 128  }
  0x57   : > { %1416 = vsyncadd (%p1893_p3), %s268_s10, 4294967168  ;;  %p1894_p4 = scmp.eq.s32.totalorder %s1533_s24, 0 }
  0x59   : > { %1418 = dma.done.wait (%p1894_p4), [#allocation7], 512   ;;  %p1895_p13 = pmov %p1894_p4 }
  0x5a   : > { %vm317_vm0 = vcmask 785408   ;;  %v1457_v0 = vmov 0.0|0.0   ;;  %v1458_v1 = vmov 0.0   ;;  %vm1459_vm1 = vmmov 0   ;;  %v321_v2 = vld [vmem:[#allocation6] sm:$0xff]  ;;  %v322_v3 = vld [vmem:[#allocation6 + $0x8] sm:$0xff] }
  0x5b   : > { %1420 = vsyncadd (%p1895_p13), [#allocation7], 4294966784  ;;  %1144 = vmatprep.subr.bf16.mxu0 %v1457_v0  ;;  %318 = vst.msk [vmem:[#allocation2] sm:$0xff] %vm317_vm0, %v1458_v1  ;;  %1141 = vmatprep.mubr.msk.f32.mxu0 %vm1459_vm1, %v1458_v1  ;;  %v323_v4 = vld [vmem:[#allocation6 + $0x10] sm:$0xff]  ;;  %v1145_v5 = vpack.c.bf16 %v322_v3, %v321_v2  ;;  %v324_v6 = vld [vmem:[#allocation6 + $0x18] sm:$0xff]  ;;  %vm325_vm2 = vcmask 261120   ;;  %v429_v18 = vlaneseq }
  0x5c   : > { %v1148_v7 = vpack.c.bf16 %v324_v6, %v323_v4  ;;  %v320_v8 = vld [vmem:[%s271_s16] sm:$0xff]  ;;  %v1107_v13 = vld [vmem:[%s1876_s2] ss:$0 sm:$0xff]  ;;  %s1460_s17 = smov 104   ;;  %s1461_s8 = smov 120   ;;  %vm560_vm3 = vcmask 64512  }
  0x5d   : > { %1146 = vmatpush3.bf16.msra.mxu0 %v1145_v5  ;;  %s1462_s6 = smov 96   ;;  %s1463_s9 = smov 112   ;;  %v1465_v16 = vmov 1983009808   ;;  %v1466_v19 = vmov 1934713408  }
  0x5e   : > { %1147 = vmatprep.subr.bf16.mxu0 %v1457_v0  ;;  %s1464_s30 = smov 64   ;;  %v427_v17 = vunpack.c.l.s4 %v1465_v16  ;;  %v459_v20 = vunpack.c.l.s4 %v1466_v19  ;;  %v430_v22 = vshrl.u32 %v429_v18, 7  ;;  %s1687_s29 = sshll.u32 %s1649_s25, 5 }
  0x5f   : > { %s1694_s12 = sshll.u32 %s1443_s21, 9  ;;  %s297_s16 = scalar_lea.vmem [#allocation8], %s1687_s29 }
  0x60   : > { %v428_v21 = vunpack.c.0.s8 %v427_v17  ;;  %v460_v25 = vunpack.c.0.s8 %v459_v20  ;;  %s1700_s10 = scalar_lea.hbm %s1877_s3, %s1694_s12  ;;  %s894_s26 = sshll.u32 %s297_s16, 4  ;;  %s1707_s26 = int_to_ptr.vmem [resolvable:$true] %s894_s26 }
  0x61   : > { %1149 = vmatpush3.bf16.msra.mxu0 %v1148_v7  ;;  %s870_s21 = scalar_lea.sflag [#allocation5], %s1649_s25  ;;  %s1305_s28 = scalar_lea.vmem %s1707_s26, 512 }
  0x62   : > { %v319_v9 = vld [vmem:[#allocation2] sm:$0xff]  ;;  %v1667_v26 = vsub.s32 %v428_v21, %v430_v22  ;;  %v1669_v32 = vsub.s32 %v460_v25, %v430_v22  ;;  %p1306_p6 = scmp.ne.s32.totalorder %s1707_s26, %s1305_s28 }
  0x64   : > { %1142 = vmatmul.mubr.msk.f32.vlgmr.msra.gmra.mrb[0].mxu0 %vm325_vm2, %v320_v8  ;;  %p1307_p8 = pnand %p1306_p6, %p1596_p10 }
  0x66   : > { %p1308_p12 = pneg %p1307_p8 }
 0x137   : > { %v395_v10 = vpop.f32.mrb[0].mxu0 }
 0x138   : > { %v399_v11 = vadd.f32 %v395_v10, %v319_v9  ;;  %v1143_v12 = vpop.f32.mrb[1].mxu0 }
 0x13a   : > { %401 = vst.msk [vmem:[#allocation2] sm:$0xff] %vm317_vm0, %v399_v11 }
 0x141   : > { %v405_v14 = vld [vmem:[#allocation2] sm:$0xff] }
 0x142   : > { %v413_v15 = vadd.f32 %v1107_v13, %v405_v14 }
 0x144   : > { %421 = vrot.lane.b32.xlu1 %v413_v15, %s1460_s17  ;;  %415 = vrot.lane.b32.xlu0 %v413_v15, %s1461_s8  ;;  %s1467_s17 = smov [#allocation8]  }
 0x145   : > { %s1309_s8 = sshll.u32 %s1467_s17, 4  ;;  %s1310_s8 = int_to_ptr.vmem [resolvable:$false] %s1309_s8 }
 0x146   : > { %p1312_p11 = scmp.lt.s32.totalorder %s1707_s26, %s1310_s8 }
 0x148   : > { %565 = vrot.lane.b32.xlu1 %v413_v15, %s1462_s6  ;;  %418 = vrot.lane.b32.xlu0 %v413_v15, %s1463_s9 }
 0x14c   : > { %717 = vrot.lane.b32.xlu1 %v413_v15, %s1464_s30 }
 0x1b6   : > { %v422_v23 = vpop.permute.xlu1 %421  ;;  %v416_v24 = vpop.permute.xlu0 %415 }
 0x1b7   : > { %567 = vrot.lane.b32.xlu0 %v416_v24, %s1462_s6  ;;  %v440_v27 = vcombine.low %v416_v24, %v422_v23  ;;  %v441_v28 = vcombine.high %v416_v24, %v422_v23 }
 0x1b9   : > { %v448_v33 = vrot.slane %v440_v27, %v1667_v26  ;;  %v455_v34 = vrot.slane %v441_v28, %v1667_v26 }
 0x1ba   : > { %v419_v29 = vpop.permute.xlu0 %418 }
 0x1bb   : > { %v424_v30 = vcombine.low %v413_v15, %v419_v29  ;;  %v425_v31 = vcombine.high %v413_v15, %v419_v29  ;;  %571 = vrot.lane.b32.xlu0 %v422_v23, %s1462_s6  ;;  %569 = vrot.lane.b32.xlu1 %v419_v29, %s1462_s6  ;;  %s1311_s6 = scalar_lea.vmem %s1310_s8, 1024 }
 0x1bc   : > { %p1313_p0 = scmp.lt.s32.totalorder %s1311_s6, %s1305_s28 }
 0x1bd   : > { %v432_v35 = vrot.slane %v424_v30, %v1667_v26  ;;  %v439_v36 = vrot.slane %v425_v31, %v1667_v26 }
 0x1be   : > { %p1314_p5 = por %p1313_p0, %p1312_p11 }
 0x1bf   : > { %v456_v37 = vcombine.low %v432_v35, %v448_v33  ;;  %v457_v38 = vcombine.high %v432_v35, %v448_v33  ;;  %v472_v39 = vcombine.low %v439_v36, %v455_v34  ;;  %v473_v40 = vcombine.high %v439_v36, %v455_v34  ;;  %719 = vrot.lane.b32.xlu0 %v416_v24, %s1464_s30 }
 0x1c0   : > { %721 = vrot.lane.b32.xlu1 %v419_v29, %s1464_s30  ;;  %p1315_p9 = pnand %p1314_p5, %p1308_p12 }
 0x1c1   : > { %v464_v41 = vrot.slane %v456_v37, %v1669_v32  ;;  %v471_v42 = vrot.slane %v457_v38, %v1669_v32  ;;  %v480_v43 = vrot.slane %v472_v39, %v1669_v32  ;;  %v487_v44 = vrot.slane %v473_v40, %v1669_v32 }
 0x1c3   : > { %v492_v45 = vcombine.low %v464_v41, %v471_v42  ;;  %v1108_v46 = vcombine.high %v464_v41, %v471_v42  ;;  %v508_v47 = vcombine.low %v480_v43, %v487_v44  ;;  %v1109_v48 = vcombine.high %v480_v43, %v487_v44  ;;  %723 = vrot.lane.b32.xlu0 %v422_v23, %s1464_s30 }
 0x1c5   : > { %v499_v49 = vrot.slane %v492_v45, %v1667_v26  ;;  %v507_v50 = vrot.slane %v1108_v46, %v1667_v26  ;;  %v515_v51 = vrot.slane %v508_v47, %v1667_v26  ;;  %v523_v52 = vrot.slane %v1109_v48, %v1667_v26 }
 0x1c7   : > { %v524_v53 = vcombine.low %v499_v49, %v507_v50  ;;  %v525_v54 = vcombine.high %v499_v49, %v507_v50  ;;  %v540_v55 = vcombine.low %v515_v51, %v523_v52  ;;  %v541_v56 = vcombine.high %v515_v51, %v523_v52 }
 0x1c9   : > { %v532_v57 = vrot.slane %v524_v53, %v1669_v32  ;;  %v539_v58 = vrot.slane %v525_v54, %v1669_v32  ;;  %v548_v59 = vrot.slane %v540_v55, %v1669_v32  ;;  %v555_v60 = vrot.slane %v541_v56, %v1669_v32 }
 0x1cb   : > { %v556_v61 = vcombine.low %v532_v57, %v548_v59  ;;  %v557_v62 = vcombine.high %v532_v57, %v548_v59  ;;  %v558_v63 = vcombine.low %v539_v58, %v555_v60  ;;  %v559_v0 = vcombine.high %v539_v58, %v555_v60 }
 0x1cd   : > { %561 = vst.msk [vmem:[%s297_s16] sm:$0xff] %vm560_vm3, %v556_v61  ;;  %562 = vst.msk [vmem:[%s297_s16 + $0x8] sm:$0xff] %vm560_vm3, %v557_v62 }
 0x1ce   : > { %563 = vst.msk [vmem:[%s297_s16 + $0x10] sm:$0xff] %vm560_vm3, %v558_v63  ;;  %564 = vst.msk [vmem:[%s297_s16 + $0x18] sm:$0xff] %vm560_vm3, %v559_v0 }
 0x1cf   : > { %1318 = shalt.err (!%p1315_p9)
}
 0x1d0   : > { %s1319_s9 = scalar_lea.hbm %s1700_s10, 512  ;;  %s1323_s15 = scalar_lea.hbm %s1877_s3, 1024 }
 0x1d1   : > { %p1320_p1 = scmp.ne.s32.totalorder %s1700_s10, %s1319_s9  ;;  %p1324_p3 = scmp.lt.u32.totalorder %s1700_s10, %s1877_s3 }
 0x1d2   : > { %p1325_p4 = scmp.lt.u32.totalorder %s1323_s15, %s1319_s9  ;;  %p1327_p6 = scmp.lt.u32.totalorder %s1319_s9, %s1700_s10 }
 0x1d3   : > { %p1321_p2 = pnand %p1320_p1, %p1596_p10 }
 0x1d4   : > { %p1326_p13 = por %p1325_p4, %p1324_p3 }
 0x1d5   : > { %p1322_p7 = pneg %p1321_p2 }
 0x1d6   : > { %p1328_p8 = por %p1327_p6, %p1326_p13 }
 0x1d8   : > { %p1329_p12 = pnand %p1328_p8, %p1322_p7 }
 0x1da   : > { %1332 = shalt.err (!%p1329_p12)
}
 0x1db   : > { %s1468_s28 = smov 128   ;;  %s1469_s8 = smov 8   ;;  %v566_v1 = vpop.permute.xlu1 %565 }
 0x1dc   : > { %1156 = dma.vmem_to_hbm [thread:$0]  (%p1596_p10), %s1707_s26, 512, %s1700_s10, %s870_s21, %s1468_s28, %s1468_s28, %s1469_s8  }
 0x1dd   : > { %s874_s25 = sand.u32 1, %s1533_s24   ;;  %s304_s10 = scalar_lea.vmem [#allocation9], %s1687_s29 }
 0x1de   : > { %s911_s26 = sshll.u32 %s304_s10, 4  ;;  %s1766_s9 = scalar_lea.hbm %s1878_s4, %s1694_s12  ;;  %s1768_s26 = int_to_ptr.vmem [resolvable:$true] %s911_s26 }
 0x1df   : > { %v718_v2 = vpop.permute.xlu1 %717  ;;  %s1780_s30 = scalar_lea.sflag [#allocation10], %s874_s25  ;;  %s1333_s14 = scalar_lea.vmem %s1768_s26, 512 }
 0x1e0   : > { %p1334_p11 = scmp.ne.s32.totalorder %s1768_s26, %s1333_s14  ;;  %s1470_s15 = smov [#allocation9]  }
 0x1e1   : > { %s1337_s16 = sshll.u32 %s1470_s15, 4  ;;  %s1338_s16 = int_to_ptr.vmem [resolvable:$false] %s1337_s16 }
 0x1e2   : > { %p1335_p0 = pnand %p1334_p11, %p1596_p10  ;;  %s1339_s17 = scalar_lea.vmem %s1338_s16, 1024 }
 0x1e3   : > { %p1340_p9 = scmp.lt.s32.totalorder %s1768_s26, %s1338_s16  ;;  %p1341_p1 = scmp.lt.s32.totalorder %s1339_s17, %s1333_s14 }
 0x1e4   : > { %p1336_p5 = pneg %p1335_p0 }
 0x1e5   : > { %p1342_p2 = por %p1341_p1, %p1340_p9 }
 0x1e7   : > { %p1343_p7 = pnand %p1342_p2, %p1336_p5 }
 0x229   : > { %v568_v3 = vpop.permute.xlu0 %567 }
 0x22d   : > { %v570_v4 = vpop.permute.xlu1 %569  ;;  %v572_v5 = vpop.permute.xlu0 %571 }
 0x22e   : > { %v577_v6 = vcombine.low %v566_v1, %v570_v4  ;;  %v578_v7 = vcombine.high %v566_v1, %v570_v4  ;;  %v593_v8 = vcombine.low %v568_v3, %v572_v5  ;;  %v594_v9 = vcombine.high %v568_v3, %v572_v5 }
 0x230   : > { %v585_v10 = vrot.slane %v577_v6, %v1667_v26  ;;  %v592_v11 = vrot.slane %v578_v7, %v1667_v26  ;;  %v601_v12 = vrot.slane %v593_v8, %v1667_v26  ;;  %v608_v13 = vrot.slane %v594_v9, %v1667_v26 }
 0x231   : > { %v720_v14 = vpop.permute.xlu0 %719 }
 0x232   : > { %v609_v15 = vcombine.low %v585_v10, %v601_v12  ;;  %v610_v16 = vcombine.high %v585_v10, %v601_v12  ;;  %v625_v17 = vcombine.low %v592_v11, %v608_v13  ;;  %v626_v18 = vcombine.high %v592_v11, %v608_v13  ;;  %v722_v19 = vpop.permute.xlu1 %721 }
 0x233   : > { %v729_v24 = vcombine.low %v718_v2, %v722_v19  ;;  %v730_v25 = vcombine.high %v718_v2, %v722_v19 }
 0x234   : > { %v617_v20 = vrot.slane %v609_v15, %v1669_v32  ;;  %v624_v21 = vrot.slane %v610_v16, %v1669_v32  ;;  %v633_v22 = vrot.slane %v625_v17, %v1669_v32  ;;  %v640_v23 = vrot.slane %v626_v18, %v1669_v32 }
 0x235   : > { %v724_v27 = vpop.permute.xlu0 %723  ;;  %v737_v39 = vrot.slane %v729_v24, %v1667_v26  ;;  %v744_v40 = vrot.slane %v730_v25, %v1667_v26 }
 0x236   : > { %v645_v28 = vcombine.low %v617_v20, %v624_v21  ;;  %v1110_v29 = vcombine.high %v617_v20, %v624_v21  ;;  %v661_v30 = vcombine.low %v633_v22, %v640_v23  ;;  %v1111_v31 = vcombine.high %v633_v22, %v640_v23 }
 0x237   : > { %v745_v33 = vcombine.low %v720_v14, %v724_v27  ;;  %v746_v34 = vcombine.high %v720_v14, %v724_v27 }
 0x238   : > { %v652_v35 = vrot.slane %v645_v28, %v1667_v26  ;;  %v660_v36 = vrot.slane %v1110_v29, %v1667_v26  ;;  %v668_v37 = vrot.slane %v661_v30, %v1667_v26  ;;  %v676_v38 = vrot.slane %v1111_v31, %v1667_v26 }
 0x239   : > { %v753_v41 = vrot.slane %v745_v33, %v1667_v26  ;;  %v760_v42 = vrot.slane %v746_v34, %v1667_v26 }
 0x23a   : > { %v677_v43 = vcombine.low %v652_v35, %v660_v36  ;;  %v678_v44 = vcombine.high %v652_v35, %v660_v36  ;;  %v693_v45 = vcombine.low %v668_v37, %v676_v38  ;;  %v694_v46 = vcombine.high %v668_v37, %v676_v38 }
 0x23b   : > { %v761_v47 = vcombine.low %v737_v39, %v753_v41  ;;  %v762_v48 = vcombine.high %v737_v39, %v753_v41  ;;  %v777_v49 = vcombine.low %v744_v40, %v760_v42  ;;  %v778_v50 = vcombine.high %v744_v40, %v760_v42 }
 0x23c   : > { %v685_v51 = vrot.slane %v677_v43, %v1669_v32  ;;  %v692_v52 = vrot.slane %v678_v44, %v1669_v32  ;;  %v701_v53 = vrot.slane %v693_v45, %v1669_v32  ;;  %v708_v54 = vrot.slane %v694_v46, %v1669_v32 }
 0x23d   : > { %v769_v55 = vrot.slane %v761_v47, %v1669_v32  ;;  %v776_v56 = vrot.slane %v762_v48, %v1669_v32  ;;  %v785_v57 = vrot.slane %v777_v49, %v1669_v32  ;;  %v792_v58 = vrot.slane %v778_v50, %v1669_v32 }
 0x23e   : > { %v709_v59 = vcombine.low %v685_v51, %v701_v53  ;;  %v710_v60 = vcombine.high %v685_v51, %v701_v53  ;;  %v711_v61 = vcombine.low %v692_v52, %v708_v54  ;;  %v712_v62 = vcombine.high %v692_v52, %v708_v54 }
 0x23f   : > { %v797_v63 = vcombine.low %v769_v55, %v776_v56  ;;  %v1112_v0 = vcombine.high %v769_v55, %v776_v56  ;;  %v813_v1 = vcombine.low %v785_v57, %v792_v58  ;;  %v1113_v2 = vcombine.high %v785_v57, %v792_v58 }
 0x240   : > { %713 = vst.msk [vmem:[%s304_s10] sm:$0xff] %vm560_vm3, %v709_v59  ;;  %714 = vst.msk [vmem:[%s304_s10 + $0x8] sm:$0xff] %vm560_vm3, %v710_v60 }
 0x241   : > { %715 = vst.msk [vmem:[%s304_s10 + $0x10] sm:$0xff] %vm560_vm3, %v711_v61  ;;  %716 = vst.msk [vmem:[%s304_s10 + $0x18] sm:$0xff] %vm560_vm3, %v712_v62  ;;  %v804_v3 = vrot.slane %v797_v63, %v1667_v26  ;;  %v812_v4 = vrot.slane %v1112_v0, %v1667_v26  ;;  %v820_v5 = vrot.slane %v813_v1, %v1667_v26 }
 0x242   : > { %v828_v6 = vrot.slane %v1113_v2, %v1667_v26 }
 0x243   : > { %1346 = shalt.err (!%p1343_p7)
}
 0x244   : > { %s1347_s24 = scalar_lea.hbm %s1766_s9, 512  ;;  %s1351_s21 = scalar_lea.hbm %s1878_s4, 1024 }
 0x245   : > { %p1348_p3 = scmp.ne.s32.totalorder %s1766_s9, %s1347_s24  ;;  %p1352_p6 = scmp.lt.u32.totalorder %s1766_s9, %s1878_s4 }
 0x246   : > { %p1353_p8 = scmp.lt.u32.totalorder %s1351_s21, %s1347_s24  ;;  %p1355_p11 = scmp.lt.u32.totalorder %s1347_s24, %s1766_s9 }
 0x247   : > { %p1349_p4 = pnand %p1348_p3, %p1596_p10 }
 0x248   : > { %p1354_p12 = por %p1353_p8, %p1352_p6 }
 0x249   : > { %p1350_p13 = pneg %p1349_p4 }
 0x24a   : > { %p1356_p0 = por %p1355_p11, %p1354_p12 }
 0x24c   : > { %p1357_p5 = pnand %p1356_p0, %p1350_p13 }
 0x24e   : > { %1360 = shalt.err (!%p1357_p5)
}
 0x24f   : > { %1157 = dma.vmem_to_hbm [thread:$0]  (%p1596_p10), %s1768_s26, 512, %s1766_s9, %s1780_s30, %s1468_s28, %s1468_s28, %s1469_s8   ;;  %v829_v26 = vcombine.low %v804_v3, %v812_v4  ;;  %v830_v7 = vcombine.high %v804_v3, %v812_v4  ;;  %v845_v8 = vcombine.low %v820_v5, %v828_v6  ;;  %v846_v9 = vcombine.high %v820_v5, %v828_v6 }
 0x250   : > { %s311_s14 = scalar_lea.vmem [#allocation11], %s1687_s29  ;;  %s1816_s17 = scalar_lea.hbm %s1879_s5, %s1694_s12 }
 0x251   : > { %s928_s16 = sshll.u32 %s311_s14, 4  ;;  %v837_v10 = vrot.slane %v829_v26, %v1669_v32  ;;  %v844_v11 = vrot.slane %v830_v7, %v1669_v32  ;;  %v853_v12 = vrot.slane %v845_v8, %v1669_v32  ;;  %v860_v13 = vrot.slane %v846_v9, %v1669_v32  ;;  %s1471_s12 = smov [#allocation11]   ;;  %s1818_s16 = int_to_ptr.vmem [resolvable:$true] %s928_s16 }
 0x252   : > { %s1361_s29 = scalar_lea.vmem %s1818_s16, 512  ;;  %s1365_s24 = sshll.u32 %s1471_s12, 4  ;;  %s1366_s24 = int_to_ptr.vmem [resolvable:$false] %s1365_s24 }
 0x253   : > { %v861_v14 = vcombine.low %v837_v10, %v853_v12  ;;  %v862_v15 = vcombine.high %v837_v10, %v853_v12  ;;  %v863_v16 = vcombine.low %v844_v11, %v860_v13  ;;  %v864_v17 = vcombine.high %v844_v11, %v860_v13  ;;  %p1362_p9 = scmp.ne.s32.totalorder %s1818_s16, %s1361_s29  ;;  %s1367_s25 = scalar_lea.vmem %s1366_s24, 1024 }
 0x254   : > { %p1368_p7 = scmp.lt.s32.totalorder %s1818_s16, %s1366_s24  ;;  %p1369_p3 = scmp.lt.s32.totalorder %s1367_s25, %s1361_s29 }
 0x255   : > { %865 = vst.msk [vmem:[%s311_s14] sm:$0xff] %vm560_vm3, %v861_v14  ;;  %866 = vst.msk [vmem:[%s311_s14 + $0x8] sm:$0xff] %vm560_vm3, %v862_v15  ;;  %p1363_p1 = pnand %p1362_p9, %p1596_p10 }
 0x256   : > { %867 = vst.msk [vmem:[%s311_s14 + $0x10] sm:$0xff] %vm560_vm3, %v863_v16  ;;  %868 = vst.msk [vmem:[%s311_s14 + $0x18] sm:$0xff] %vm560_vm3, %v864_v17  ;;  %p1370_p4 = por %p1369_p3, %p1368_p7 }
 0x257   : > { %p1364_p2 = pneg %p1363_p1 }
 0x259   : > { %p1371_p13 = pnand %p1370_p4, %p1364_p2 }
 0x25b   : > { %1374 = shalt.err (!%p1371_p13)
}
 0x25c   : > { %s1375_s10 = scalar_lea.hbm %s1816_s17, 512  ;;  %s1379_s15 = scalar_lea.hbm %s1879_s5, 1024 }
 0x25d   : > { %p1376_p6 = scmp.ne.s32.totalorder %s1816_s17, %s1375_s10  ;;  %p1380_p11 = scmp.lt.u32.totalorder %s1816_s17, %s1879_s5 }
 0x25e   : > { %p1381_p0 = scmp.lt.u32.totalorder %s1379_s15, %s1375_s10  ;;  %p1383_p9 = scmp.lt.u32.totalorder %s1375_s10, %s1816_s17 }
 0x25f   : > { %p1377_p8 = pnand %p1376_p6, %p1596_p10 }
 0x260   : > { %p1382_p5 = por %p1381_p0, %p1380_p11 }
 0x261   : > { %p1378_p12 = pneg %p1377_p8 }
 0x262   : > { %p1384_p1 = por %p1383_p9, %p1382_p5 }
 0x264   : > { %p1385_p2 = pnand %p1384_p1, %p1378_p12 }
 0x266   : > { %1388 = shalt.err (!%p1385_p2)
}
 0x267   : > { %1158 = dma.vmem_to_hbm [thread:$0]  (%p1596_p10), %s1818_s16, 512, %s1816_s17, %s1780_s30, %s1468_s28, %s1468_s28, %s1469_s8  }
 0x268 PF: > { %s943_s9 = sand.u32 1, %s1431_s18   ;;  %p1896_p7 = scmp.ne.s32.totalorder %s1885_s27, 0 }
 0x269   : > { %p1897_p3 = scmp.ge.s32.totalorder %s1451_s23, 2  ;;  %s944_s29 = scalar_lea.sflag [#allocation5], %s943_s9 }
 0x26b   : > { %p1171_p4 = pnand %p1897_p3, %p1896_p7 }
 0x26d   : > { %1422 = dma.done.wait (!%p1171_p4), %s944_s29, 512  }
 0x26e   : > { %1424 = vsyncadd (!%p1171_p4), %s944_s29, 4294966784  ;;  %s1898_s11 = sadd.s32 4294967294, %s1451_s23  }
 0x26f   : > { %s952_s12 = sand.u32 1, %s1898_s11  }
 0x270   : > { %s953_s24 = scalar_lea.sflag [#allocation10], %s952_s12 }
 0x271   : > { %1426 = dma.done.wait (!%p1171_p4), %s953_s24, 1024  }
 0x272   : > { %1428 = vsyncadd (!%p1171_p4), %s953_s24, 4294966272  ;;  %s26_s23 = sadd.s32 1, %s1451_s23   ;;  %s1899_s18 = smov %s1435_s19 }
 0x273   : > { %p23_p10 = scmp.ge.s32.totalorder %s26_s23, 4   ;;  %s1900_s19 = smov %s1439_s20 }
 0x274   : > { %s1901_s20 = smov %s1605_s13  ;;  %s1902_s21 = smov %s1447_s22 }
 0x275   : > { %s1903_s22 = smov %s1905_s7  ;;  %25 = sbr.rel (!%p23_p10) target bundleno = 9 (0x9), region = 122 }
 0x27c   :  { %967 = vsyncpa [#allocation4], 1 }
 0x27d   :  { %969 = vsyncpa [#allocation4 + $0x1], 1 }
 0x27e   :  { %970 = vsyncpa [#allocation7], 1 }
 0x27f   :  { %971 = vsyncpa [#allocation5], 1 }
 0x280   :  { %973 = vsyncpa [#allocation5 + $0x1], 1 }
 0x281   :  { %974 = vsyncpa [#allocation10], 1 }
 0x282   :  { %976 = vsyncpa [#allocation10 + $0x1], 1 }

</bundles_post_ra>
